<compile_context>
chip_gen: v7x
topology: tpu7x:2x2x1
jax: 0.10.0
libtpu: 0.0.40
codegen_flags: <defaults>
</compile_context>

<pallas_src>
import math
import jax
import jax.numpy as jnp
from jax.experimental import pallas as pl
from jax.experimental.pallas import tpu as pltpu


def _round_up(v, m):
    return ((v + m - 1) // m) * m


def _pick_tile(total, target):
    """Largest multiple of 128 that divides `total` (a multiple of 128) and is <= target."""
    t = min(target, total)
    t -= t % 128
    t = max(t, 128)
    while total % t != 0:
        t -= 128
    return t


def _support_kernel(x_ref, w_ref, s_ref):
    # support = x @ weight (f32 accumulation), stored in the compute dtype.
    s_ref[...] = jnp.dot(
        x_ref[...], w_ref[...], preferred_element_type=jnp.float32
    ).astype(s_ref.dtype)


def _adj_matmul_bias_kernel(adj_ref, s_ref, b_ref, o_ref, acc_ref):
    # Grid: (row tiles of adj [parallel], K tiles over the N contraction [arbitrary]).
    k = pl.program_id(1)

    @pl.when(k == 0)
    def _():
        acc_ref[...] = jnp.zeros_like(acc_ref)

    acc_ref[...] += jnp.dot(
        adj_ref[...], s_ref[...], preferred_element_type=jnp.float32
    )

    @pl.when(k == pl.num_programs(1) - 1)
    def _():
        # f32 epilogue (bias add + cast) -- safe on v5e as well.
        o_ref[...] = (acc_ref[...] + b_ref[...]).astype(o_ref.dtype)


def gcn_decoder_forward(x, adj_inv, weight, bias, *, tm=256, tk=256,
                        compute_dtype=jnp.bfloat16):
    """Pallas implementation of GraphConvolutionDecoder.forward."""
    n, f_in = x.shape
    f_out = weight.shape[1]
    assert adj_inv.shape == (n, n)

    out_dtype = x.dtype

    # Pad so every block is (8, 128)-aligned; zero padding is exact for matmul.
    n_pad = _round_up(n, 128)
    f_out_pad = _round_up(f_out, 128)
    tm = _pick_tile(n_pad, tm)
    tk = _pick_tile(n_pad, tk)

    x_p = jnp.pad(x, ((0, n_pad - n), (0, 0)))
    adj_p = jnp.pad(adj_inv, ((0, n_pad - n), (0, n_pad - n))).astype(compute_dtype)
    w_p = jnp.pad(weight, ((0, 0), (0, f_out_pad - f_out)))
    b_p = jnp.pad(bias, (0, f_out_pad - f_out)).reshape(1, f_out_pad).astype(jnp.float32)

    # ---- support = x @ weight (tiny, hoisted out of the main grid) ----
    support = pl.pallas_call(
        _support_kernel,
        out_shape=jax.ShapeDtypeStruct((n_pad, f_out_pad), compute_dtype),
        grid_spec=pltpu.PrefetchScalarGridSpec(
            num_scalar_prefetch=0,
            grid=(n_pad // tm,),
            in_specs=[
                pl.BlockSpec((tm, f_in), lambda i: (i, 0)),
                pl.BlockSpec((f_in, f_out_pad), lambda i: (0, 0)),
            ],
            out_specs=pl.BlockSpec((tm, f_out_pad), lambda i: (i, 0)),
        ),
        compiler_params=pltpu.CompilerParams(
            dimension_semantics=("parallel",),
        ),
    )(x_p, w_p)

    # ---- output = adj_inv @ support + bias (M x K tiled, f32 accumulator) ----
    adj_bytes = n_pad * n_pad * adj_p.dtype.itemsize
    sup_bytes = (n_pad // tm) * n_pad * f_out_pad * support.dtype.itemsize
    out_bytes = n_pad * f_out_pad * jnp.dtype(out_dtype).itemsize
    cost = pl.CostEstimate(
        flops=2 * n_pad * n_pad * f_out_pad,
        transcendentals=0,
        bytes_accessed=adj_bytes + sup_bytes + out_bytes,
    )

    out_p = pl.pallas_call(
        _adj_matmul_bias_kernel,
        out_shape=jax.ShapeDtypeStruct((n_pad, f_out_pad), out_dtype),
        grid_spec=pltpu.PrefetchScalarGridSpec(
            num_scalar_prefetch=0,
            grid=(n_pad // tm, n_pad // tk),
            in_specs=[
                pl.BlockSpec((tm, tk), lambda i, k: (i, k)),         # adj tile
                pl.BlockSpec((tk, f_out_pad), lambda i, k: (k, 0)),  # support K-slab
                pl.BlockSpec((1, f_out_pad), lambda i, k: (0, 0)),   # bias
            ],
            out_specs=pl.BlockSpec((tm, f_out_pad), lambda i, k: (i, 0)),
            scratch_shapes=[pltpu.VMEM((tm, f_out_pad), jnp.float32)],
        ),
        compiler_params=pltpu.CompilerParams(
            dimension_semantics=("parallel", "arbitrary"),
            vmem_limit_bytes=48 * 1024 * 1024,
        ),
        cost_estimate=cost,
    )(adj_p, support, b_p)

    return out_p[:n, :f_out]


def init_params(key, in_features, out_features):
    """Deterministic init matching reset_parameters(): U(-stdv, stdv)."""
    stdv = 1.0 / math.sqrt(out_features)
    kw, kb = jax.random.split(key)
    weight = jax.random.uniform(
        kw, (in_features, out_features), jnp.float32, minval=-stdv, maxval=stdv
    )
    bias = jax.random.uniform(
        kb, (out_features,), jnp.float32, minval=-stdv, maxval=stdv
    )
    return weight, bias


def _reference(x, adj_inv, weight, bias, compute_dtype=jnp.bfloat16):
    # Reference with the same bf16 operand rounding as the kernel path.
    support = jnp.dot(x, weight, precision=jax.lax.Precision.HIGHEST)
    out = jnp.dot(
        adj_inv.astype(compute_dtype).astype(jnp.float32),
        support.astype(compute_dtype).astype(jnp.float32),
        precision=jax.lax.Precision.HIGHEST,
    )
    return out + bias[None, :]


if __name__ == "__main__":
    # Case 1: aligned shapes -- N=512 nodes, 64 -> 128 features (grid 2x2 at 256 tiles).
    N, F_IN, F_OUT = 512, 64, 128
    key = jax.random.PRNGKey(0)
    k_x, k_adj, k_param = jax.random.split(key, 3)
    x = jax.random.normal(k_x, (N, F_IN), jnp.float32)
    adj_inv = jax.random.normal(k_adj, (N, N), jnp.float32)
    weight, bias = init_params(k_param, F_IN, F_OUT)

    out = jax.block_until_ready(gcn_decoder_forward(x, adj_inv, weight, bias))
    assert out.shape == (N, F_OUT)
    ref = _reference(x, adj_inv, weight, bias)
    err = jnp.max(jnp.abs(out - ref)) / (jnp.max(jnp.abs(ref)) + 1e-6)
    assert float(err) < 2e-2, f"mismatch vs reference: rel_err={float(err):.4e}"

    # Case 2: ragged / non-aligned shapes exercise the padding path.
    N2, F_IN2, F_OUT2 = 200, 48, 96
    k_x2, k_adj2, k_param2 = jax.random.split(jax.random.PRNGKey(1), 3)
    x2 = jax.random.normal(k_x2, (N2, F_IN2), jnp.float32)
    adj2 = jax.random.normal(k_adj2, (N2, N2), jnp.float32)
    w2, b2 = init_params(k_param2, F_IN2, F_OUT2)

    out2 = jax.block_until_ready(gcn_decoder_forward(x2, adj2, w2, b2))
    assert out2.shape == (N2, F_OUT2)
    ref2 = _reference(x2, adj2, w2, b2)
    err2 = jnp.max(jnp.abs(out2 - ref2)) / (jnp.max(jnp.abs(ref2)) + 1e-6)
    assert float(err2) < 2e-2, f"mismatch (ragged) vs reference: rel_err={float(err2):.4e}"

    print("KERNEL_OK")
</pallas_src>

<mosaic_0001>
module attributes {stable_mosaic.version = 11 : i64} {
  func.func @_support_kernel(%arg0: i32, %arg1: memref<256x64xf32, #tpu.memory_space<vmem>>, %arg2: memref<64x128xf32, #tpu.memory_space<vmem>>, %arg3: memref<256x128xbf16, #tpu.memory_space<vmem>>) attributes {dimension_semantics = [#tpu.dimension_semantics<parallel>], iteration_bounds = array<i64: 2>, scalar_prefetch = 0 : i64, scratch_operands = 0 : i64, tpu.core_type = #tpu.core_type<tc>, window_params = [{transform_indices = @transform_0, window_bounds = array<i64: 256, 64>}, {pipeline_mode = #tpu.pipeline_mode<synchronous>, transform_indices = @transform_1, window_bounds = array<i64: 64, 128>}, {transform_indices = @transform_2, window_bounds = array<i64: 256, 128>}]} {
    %c0 = arith.constant 0 : index
    %c0_0 = arith.constant 0 : index
    %0 = vector.load %arg1[%c0, %c0_0] : memref<256x64xf32, #tpu.memory_space<vmem>>, vector<256x64xf32>
    %c0_1 = arith.constant 0 : index
    %c0_2 = arith.constant 0 : index
    %1 = vector.load %arg2[%c0_1, %c0_2] : memref<64x128xf32, #tpu.memory_space<vmem>>, vector<64x128xf32>
    %cst = arith.constant dense<0.000000e+00> : vector<256x128xf32>
    %2 = tpu.matmul %0, %1, %cst {dimension_numbers = #tpu.dot_dimension_numbers<[1], [0], [0], [1], [0, 0, 1, 1], [], []>} : vector<256x64xf32>, vector<64x128xf32>, vector<256x128xf32> -> vector<256x128xf32>
    %3 = arith.truncf %2 : vector<256x128xf32> to vector<256x128xbf16>
    %c0_3 = arith.constant 0 : index
    %c0_4 = arith.constant 0 : index
    %4 = vector.load %arg3[%c0_3, %c0_4] : memref<256x128xbf16, #tpu.memory_space<vmem>>, vector<256x128xbf16>
    tpu.vector_store %arg3[%c0_3, %c0_4], %3 {strides = array<i32>} : memref<256x128xbf16, #tpu.memory_space<vmem>>, vector<256x128xbf16>,
    return
  }
  func.func @transform_0(%arg0: i32) -> (i32, i32) {
    %c0_i32 = arith.constant 0 : i32
    %c0_i32_0 = arith.constant 0 : i32
    return %arg0, %c0_i32 : i32, i32
  }
  func.func @transform_1(%arg0: i32) -> (i32, i32) {
    %c0_i32 = arith.constant 0 : i32
    %c0_i32_0 = arith.constant 0 : i32
    %c0_i32_1 = arith.constant 0 : i32
    return %c0_i32, %c0_i32_0 : i32, i32
  }
  func.func @transform_2(%arg0: i32) -> (i32, i32) {
    %c0_i32 = arith.constant 0 : i32
    %c0_i32_0 = arith.constant 0 : i32
    return %arg0, %c0_i32 : i32, i32
  }
}

</mosaic_0001>

<bundles_post_ra>
// kernel: tpu_custom_call.1
= control target key start
LH: loop header
LB: loop body
LE: loop exit
PB: predicated region body
PF: predicated region fallthrough
CT: control target
= control target key end

     0   :  { %7 = vsyncpa [#allocation3], 0  ;;  %s1413_s0 = inlined_call_operand.vmem [shape: f32[512,64], index: 0, kind: input, shape index: {}]   ;;  %s1414_s1 = inlined_call_operand.vmem [shape: f32[64,128], index: 1, kind: input, shape index: {}]   ;;  %s1415_s2 = inlined_call_operand.hbm [shape: bf16[512,128], index: 2, kind: output, shape index: {}]  }
   0x1   :  { %9 = vsyncpa [#allocation3 + $0x1], 0  ;;  %s1198_s9 = smov 0   ;;  %s1200_s10 = smov 0  }
   0x2   :  { %s1202_s11 = smov 0   ;;  %s1204_s12 = smov 0  }
   0x3 LB: > { %s1219_s13 = sadd.s32 4294967295, %s1178_s12   ;;  %s743_s14 = sadd.s32 4294967294, %s1178_s12   ;;  %s1178_s12 = sphi %s1204_s12, %s1421_s12   ;;  %s1174_s11 = sphi %s1202_s11, %s1420_s11   ;;  %s1170_s10 = sphi %s1200_s10, %s1419_s10   ;;  %s1166_s9 = sphi %s1198_s9, %s1418_s9  }
   0x4   : > { %s1223_s15 = sadd.s32 1, %s1178_s12   ;;  %s69_s16 = sadd.s32 1, %s1174_s11 }
   0x5   : > { %s66_s17 = ssub.s32 %s1178_s12, %s1223_s15  ;;  %p79_p0 = scmp.ne.s32.totalorder %s1174_s11, %s1170_s10 }
   0x6   : > { %p67_p1 = scmp.eq.s32.totalorder %s66_s17, 0  ;;  %p80_p2 = scmp.eq.s32.totalorder %s1219_s13, 1 }
   0x7   : > { %p85_p3 = scmp.ne.s32.totalorder %s1170_s10, %s1166_s9  ;;  %p86_p4 = scmp.eq.s32.totalorder %s743_s14, 1 }
   0x8   : > { %s1234_s18 = scalar_select %p67_p1, %s1174_s11, %s69_s16  }
   0x9   : > { %p1236_p5 = por %p80_p2, %p79_p0  ;;  %p1240_p6 = por %p86_p4, %p85_p3 }
   0xa   : > { %p746_p7 = scmp.ge.s32.totalorder %s1178_s12, 1  ;;  %p116_p8 = scmp.lt.s32.totalorder %s1178_s12, 3 }
   0xc   : > { %p117_p9 = pnand %p746_p7, %p116_p8 }
   0xd   : > { %v177_v0 = vld [vmem:[%s1414_s1] sm:$0xff] (!%p117_p9)  ;;  %v178_v1 = vld [vmem:[%s1414_s1 + $0x8] sm:$0xff] (!%p117_p9)  ;;  %v179_v2 = vld [vmem:[%s1414_s1 + $0x10] sm:$0xff] (!%p117_p9)  ;;  %s748_s27 = sshll.u32 (!%p117_p9), %s1219_s13, 5  ;;  %vm185_vm0 = vcmask (!%p117_p9), 523264   ;;  %s135_s23 = sand.u32 (!%p117_p9), 1, %s1170_s10  }
   0xe   : > { %120 = sbr.rel (%p117_p9) target bundleno = 291 (0x123), region = 28  ;;  %v1051_v3 = vpack.c.bf16 (!%p117_p9), %v178_v1, %v177_v0  ;;  %v180_v4 = vld [vmem:[%s1414_s1 + $0x18] sm:$0xff] (!%p117_p9)  ;;  %p139_p10 = scmp.lt.s32.totalorder (!%p117_p9), %s748_s27, 63  ;;  %v181_v6 = vld [vmem:[%s1414_s1 + $0x20] sm:$0xff] (!%p117_p9)  ;;  %v182_v7 = vld [vmem:[%s1414_s1 + $0x28] sm:$0xff] (!%p117_p9) }
   0xf   : > { %v1055_v5 = vpack.c.bf16 (!%p117_p9), %v180_v4, %v179_v2  ;;  %v1059_v8 = vpack.c.bf16 (!%p117_p9), %v182_v7, %v181_v6  ;;  %v183_v9 = vld [vmem:[%s1414_s1 + $0x30] sm:$0xff] (!%p117_p9)  ;;  %v184_v10 = vld [vmem:[%s1414_s1 + $0x38] sm:$0xff] (!%p117_p9)  ;;  %s747_s24 = sshll.u32 (!%p117_p9), %s135_s23, 7  ;;  %s851_s26 = sshll.u32 (!%p117_p9), %s1219_s13, 11 }
  0x10   : > { %1052 = vmatprep.subr.bf16.mxu0 (!%p117_p9), %v1051_v3  ;;  %1067 = vmatprep.subr.bf16.mxu1 (!%p117_p9), %v1051_v3  ;;  %v1063_v13 = vpack.c.bf16 (!%p117_p9), %v184_v10, %v183_v9  ;;  %s1343_s25 = scalar_lea.vmem (!%p117_p9), [#allocation2], %s747_s24  ;;  %s1364_s30 = scalar_lea.hbm (!%p117_p9), %s1415_s2, %s851_s26 }
  0x11   : > { %1054 = vmatpush3.bf16.msra.mxu0 (!%p117_p9), %v1051_v3  ;;  %1071 = vmatpush3.bf16.msra.mxu1 (!%p117_p9), %v1051_v3  ;;  %s1372_s13 = scalar_lea.sflag (!%p117_p9), [#allocation3], %s135_s23  ;;  %s1180_s4 = smov (!%p117_p9), [#allocation2]  }
  0x12   : > { %1056 = vmatprep.subr.bf16.mxu0 (!%p117_p9), %v1055_v5  ;;  %1068 = vmatprep.subr.bf16.mxu1 (!%p117_p9), %v1055_v5  ;;  %s1120_s5 = sshll.u32 (!%p117_p9), %s1180_s4, 4  ;;  %s1121_s5 = int_to_ptr.vmem [resolvable:$false] %s1120_s5 }
  0x15   : > { %s1423_s27 = smov (!%p139_p10, %s748_s27), 63  ;;  %1058 = vmatpush3.bf16.msra.mxu0 %v1055_v5  ;;  %1072 = vmatpush3.bf16.msra.mxu1 %v1055_v5 }
  0x16   : > { %s749_s6 = sshll.u32 %s1423_s27, 3  ;;  %1060 = vmatprep.subr.bf16.mxu0 %v1059_v8  ;;  %1069 = vmatprep.subr.bf16.mxu1 %v1059_v8  ;;  %s681_s27 = sshll.u32 %s1343_s25, 4  ;;  %s1366_s27 = int_to_ptr.vmem [resolvable:$true] %s681_s27 }
  0x17   : > { %s1274_s22 = scalar_lea.vmem %s1413_s0, %s749_s6  ;;  %s1116_s3 = scalar_lea.vmem %s1366_s27, 2048 }
  0x18   : > { %v145_v11 = vld [vmem:[%s1274_s22] sm:$0xff]  ;;  %v146_v14 = vld [vmem:[%s1274_s22 + $0x8] sm:$0xff]  ;;  %v147_v16 = vld [vmem:[%s1274_s22 + $0x10] sm:$0xff]  ;;  %p1117_p11 = scmp.ne.s32.totalorder %s1366_s27, %s1116_s3  ;;  %s1122_s6 = scalar_lea.vmem %s1121_s5, 4096 }
  0x19   : > { %v161_v12 = vld [vmem:[%s1274_s22 + $0x80] sm:$0xff]  ;;  %1003 = vmatprep.mubr.msk.f32.mxu0 %vm185_vm0, %v145_v11  ;;  %1062 = vmatpush3.bf16.msra.mxu0 %v1059_v8  ;;  %v162_v15 = vld [vmem:[%s1274_s22 + $0x88] sm:$0xff]  ;;  %v163_v17 = vld [vmem:[%s1274_s22 + $0x90] sm:$0xff]  ;;  %p1123_p0 = scmp.lt.s32.totalorder %s1366_s27, %s1121_s5  ;;  %p1124_p1 = scmp.lt.s32.totalorder %s1122_s6, %s1116_s3 }
  0x1a   : > { %1027 = vmatprep.mubr.msk.f32.mxu1 %vm185_vm0, %v161_v12  ;;  %1073 = vmatpush3.bf16.msra.mxu1 %v1059_v8  ;;  %v148_v18 = vld [vmem:[%s1274_s22 + $0x18] sm:$0xff]  ;;  %v149_v20 = vld [vmem:[%s1274_s22 + $0x20] sm:$0xff]  ;;  %v150_v22 = vld [vmem:[%s1274_s22 + $0x28] sm:$0xff]  ;;  %p1118_p12 = pnand %p1117_p11, %p1236_p5 }
  0x1b   : > { %1064 = vmatprep.subr.bf16.mxu0 %v1063_v13  ;;  %1070 = vmatprep.subr.bf16.mxu1 %v1063_v13  ;;  %v164_v19 = vld [vmem:[%s1274_s22 + $0x98] sm:$0xff]  ;;  %v165_v21 = vld [vmem:[%s1274_s22 + $0xa0] sm:$0xff]  ;;  %v166_v23 = vld [vmem:[%s1274_s22 + $0xa8] sm:$0xff]  ;;  %p1125_p2 = por %p1124_p1, %p1123_p0 }
  0x1c   : > { %v151_v24 = vld [vmem:[%s1274_s22 + $0x30] sm:$0xff]  ;;  %v152_v26 = vld [vmem:[%s1274_s22 + $0x38] sm:$0xff]  ;;  %v153_v28 = vld [vmem:[%s1274_s22 + $0x40] sm:$0xff]  ;;  %p1119_p13 = pneg %p1118_p12 }
  0x1d   : > { %1066 = vmatpush3.bf16.msra.mxu0 %v1063_v13  ;;  %v167_v25 = vld [vmem:[%s1274_s22 + $0xb0] sm:$0xff]  ;;  %v168_v27 = vld [vmem:[%s1274_s22 + $0xb8] sm:$0xff]  ;;  %v169_v29 = vld [vmem:[%s1274_s22 + $0xc0] sm:$0xff] }
  0x1e   : > { %1074 = vmatpush3.bf16.msra.mxu1 %v1063_v13  ;;  %v154_v30 = vld [vmem:[%s1274_s22 + $0x48] sm:$0xff]  ;;  %v155_v32 = vld [vmem:[%s1274_s22 + $0x50] sm:$0xff]  ;;  %v156_v34 = vld [vmem:[%s1274_s22 + $0x58] sm:$0xff]  ;;  %p1126_p3 = pnand %p1125_p2, %p1119_p13 }
  0x1f   : > { %v170_v31 = vld [vmem:[%s1274_s22 + $0xc8] sm:$0xff]  ;;  %v171_v33 = vld [vmem:[%s1274_s22 + $0xd0] sm:$0xff]  ;;  %v172_v35 = vld [vmem:[%s1274_s22 + $0xd8] sm:$0xff] }
  0x20   : > { %1004 = vmatmul.mubr.msk.f32.vlgmr.msra.gmra.mrb[0].mxu0 %vm185_vm0, %v146_v14  ;;  %v157_v36 = vld [vmem:[%s1274_s22 + $0x60] sm:$0xff]  ;;  %v158_v38 = vld [vmem:[%s1274_s22 + $0x68] sm:$0xff]  ;;  %v159_v40 = vld [vmem:[%s1274_s22 + $0x70] sm:$0xff] }
  0x21   : > { %1028 = vmatmul.mubr.msk.f32.vlgmr.msra.gmra.mrb[0].mxu1 %vm185_vm0, %v162_v15  ;;  %1006 = vmatprep.mubr.msk.f32.mxu0 %vm185_vm0, %v147_v16  ;;  %v173_v37 = vld [vmem:[%s1274_s22 + $0xe0] sm:$0xff]  ;;  %v174_v39 = vld [vmem:[%s1274_s22 + $0xe8] sm:$0xff]  ;;  %v175_v41 = vld [vmem:[%s1274_s22 + $0xf0] sm:$0xff] }
  0x22   : > { %1030 = vmatprep.mubr.msk.f32.mxu1 %vm185_vm0, %v163_v17  ;;  %v160_v42 = vld [vmem:[%s1274_s22 + $0x78] sm:$0xff] }
  0x23   : > { %v176_v43 = vld [vmem:[%s1274_s22 + $0xf8] sm:$0xff] }
  0x24   : > { %1007 = vmatmul.mubr.msk.f32.gmra.mrb[2].mxu0 %vm185_vm0, %v148_v18 }
  0x25   : > { %1031 = vmatmul.mubr.msk.f32.gmra.mrb[2].mxu1 %vm185_vm0, %v164_v19  ;;  %1009 = vmatprep.mubr.msk.f32.mxu0 %vm185_vm0, %v149_v20 }
  0x26   : > { %1033 = vmatprep.mubr.msk.f32.mxu1 %vm185_vm0, %v165_v21 }
  0x28   : > { %1010 = vmatmul.mubr.msk.f32.gmra.mrb[4].mxu0 %vm185_vm0, %v150_v22 }
  0x29   : > { %1034 = vmatmul.mubr.msk.f32.gmra.mrb[4].mxu1 %vm185_vm0, %v166_v23  ;;  %1012 = vmatprep.mubr.msk.f32.mxu0 %vm185_vm0, %v151_v24 }
  0x2a   : > { %1036 = vmatprep.mubr.msk.f32.mxu1 %vm185_vm0, %v167_v25 }
  0x2c   : > { %1013 = vmatmul.mubr.msk.f32.gmra.mrb[6].mxu0 %vm185_vm0, %v152_v26 }
  0x2d   : > { %1037 = vmatmul.mubr.msk.f32.gmra.mrb[6].mxu1 %vm185_vm0, %v168_v27  ;;  %1015 = vmatprep.mubr.msk.f32.mxu0 %vm185_vm0, %v153_v28 }
  0x2e   : > { %1039 = vmatprep.mubr.msk.f32.mxu1 %vm185_vm0, %v169_v29 }
  0x30   : > { %1016 = vmatmul.mubr.msk.f32.gmra.mrb[8].mxu0 %vm185_vm0, %v154_v30 }
  0x31   : > { %1040 = vmatmul.mubr.msk.f32.gmra.mrb[8].mxu1 %vm185_vm0, %v170_v31  ;;  %1018 = vmatprep.mubr.msk.f32.mxu0 %vm185_vm0, %v155_v32 }
  0x32   : > { %1042 = vmatprep.mubr.msk.f32.mxu1 %vm185_vm0, %v171_v33 }
  0x34   : > { %1019 = vmatmul.mubr.msk.f32.gmra.mrb[10].mxu0 %vm185_vm0, %v156_v34 }
  0x35   : > { %1043 = vmatmul.mubr.msk.f32.gmra.mrb[10].mxu1 %vm185_vm0, %v172_v35  ;;  %1021 = vmatprep.mubr.msk.f32.mxu0 %vm185_vm0, %v157_v36 }
  0x36   : > { %1045 = vmatprep.mubr.msk.f32.mxu1 %vm185_vm0, %v173_v37 }
  0x38   : > { %1022 = vmatmul.mubr.msk.f32.gmra.mrb[12].mxu0 %vm185_vm0, %v158_v38 }
  0x39   : > { %1046 = vmatmul.mubr.msk.f32.gmra.mrb[12].mxu1 %vm185_vm0, %v174_v39  ;;  %1024 = vmatprep.mubr.msk.f32.mxu0 %vm185_vm0, %v159_v40 }
  0x3a   : > { %1048 = vmatprep.mubr.msk.f32.mxu1 %vm185_vm0, %v175_v41 }
  0x3c   : > { %1025 = vmatmul.mubr.msk.f32.gmra.mrb[14].mxu0 %vm185_vm0, %v160_v42 }
  0x3d   : > { %1049 = vmatmul.mubr.msk.f32.gmra.mrb[14].mxu1 %vm185_vm0, %v176_v43 }
  0xf3   : > { %v1005_v44 = vpop.f32.mrb[0].mxu0 }
  0xf4   : > { %v1029_v45 = vpop.f32.mrb[0].mxu1  ;;  %v348_v46 = vpop.f32.mrb[1].mxu0 }
  0xf5   : > { %v428_v47 = vpop.f32.mrb[1].mxu1  ;;  %v855_v48 = vpack.c.bf16 %v1005_v44, %v348_v46 }
  0xf6   : > { %v895_v49 = vpack.c.bf16 %v1029_v45, %v428_v47 }
  0xf7   : > { %856 = vst [vmem:[%s1343_s25] sm:$0xff] %v855_v48   ;;  %v1008_v50 = vpop.f32.mrb[2].mxu0 }
  0xf8   : > { %939 = vst [vmem:[%s1343_s25 + $0x40] sm:$0xff] %v895_v49   ;;  %v1032_v51 = vpop.f32.mrb[2].mxu1  ;;  %v358_v52 = vpop.f32.mrb[3].mxu0 }
  0xf9   : > { %v438_v53 = vpop.f32.mrb[3].mxu1  ;;  %v860_v54 = vpack.c.bf16 %v1008_v50, %v358_v52 }
  0xfa   : > { %v900_v55 = vpack.c.bf16 %v1032_v51, %v438_v53 }
  0xfb   : > { %932 = vst [vmem:[%s1343_s25 + $0x8] sm:$0xff] %v860_v54   ;;  %v1011_v56 = vpop.f32.mrb[4].mxu0 }
  0xfc   : > { %940 = vst [vmem:[%s1343_s25 + $0x48] sm:$0xff] %v900_v55   ;;  %v1035_v57 = vpop.f32.mrb[4].mxu1  ;;  %v368_v58 = vpop.f32.mrb[5].mxu0 }
  0xfd   : > { %v448_v59 = vpop.f32.mrb[5].mxu1  ;;  %v865_v60 = vpack.c.bf16 %v1011_v56, %v368_v58 }
  0xfe   : > { %v905_v61 = vpack.c.bf16 %v1035_v57, %v448_v59 }
  0xff   : > { %933 = vst [vmem:[%s1343_s25 + $0x10] sm:$0xff] %v865_v60   ;;  %v1014_v62 = vpop.f32.mrb[6].mxu0 }
 0x100   : > { %941 = vst [vmem:[%s1343_s25 + $0x50] sm:$0xff] %v905_v61   ;;  %v1038_v63 = vpop.f32.mrb[6].mxu1  ;;  %v378_v0 = vpop.f32.mrb[7].mxu0 }
 0x101   : > { %v458_v1 = vpop.f32.mrb[7].mxu1  ;;  %v870_v2 = vpack.c.bf16 %v1014_v62, %v378_v0 }
 0x102   : > { %v910_v3 = vpack.c.bf16 %v1038_v63, %v458_v1 }
 0x103   : > { %934 = vst [vmem:[%s1343_s25 + $0x18] sm:$0xff] %v870_v2   ;;  %v1017_v4 = vpop.f32.mrb[8].mxu0 }
 0x104   : > { %942 = vst [vmem:[%s1343_s25 + $0x58] sm:$0xff] %v910_v3   ;;  %v1041_v5 = vpop.f32.mrb[8].mxu1  ;;  %v388_v6 = vpop.f32.mrb[9].mxu0 }
 0x105   : > { %v468_v7 = vpop.f32.mrb[9].mxu1  ;;  %v875_v8 = vpack.c.bf16 %v1017_v4, %v388_v6 }
 0x106   : > { %v915_v9 = vpack.c.bf16 %v1041_v5, %v468_v7 }
 0x107   : > { %935 = vst [vmem:[%s1343_s25 + $0x20] sm:$0xff] %v875_v8   ;;  %v1020_v10 = vpop.f32.mrb[10].mxu0 }
 0x108   : > { %943 = vst [vmem:[%s1343_s25 + $0x60] sm:$0xff] %v915_v9   ;;  %v1044_v11 = vpop.f32.mrb[10].mxu1  ;;  %v398_v12 = vpop.f32.mrb[11].mxu0 }
 0x109   : > { %v478_v13 = vpop.f32.mrb[11].mxu1  ;;  %v880_v14 = vpack.c.bf16 %v1020_v10, %v398_v12 }
 0x10a   : > { %v920_v15 = vpack.c.bf16 %v1044_v11, %v478_v13 }
 0x10b   : > { %936 = vst [vmem:[%s1343_s25 + $0x28] sm:$0xff] %v880_v14   ;;  %v1023_v16 = vpop.f32.mrb[12].mxu0 }
 0x10c   : > { %944 = vst [vmem:[%s1343_s25 + $0x68] sm:$0xff] %v920_v15   ;;  %v1047_v17 = vpop.f32.mrb[12].mxu1  ;;  %v408_v18 = vpop.f32.mrb[13].mxu0 }
 0x10d   : > { %v488_v19 = vpop.f32.mrb[13].mxu1  ;;  %v885_v20 = vpack.c.bf16 %v1023_v16, %v408_v18 }
 0x10e   : > { %v925_v21 = vpack.c.bf16 %v1047_v17, %v488_v19 }
 0x10f   : > { %937 = vst [vmem:[%s1343_s25 + $0x30] sm:$0xff] %v885_v20   ;;  %v1026_v22 = vpop.f32.mrb[14].mxu0 }
 0x110   : > { %945 = vst [vmem:[%s1343_s25 + $0x70] sm:$0xff] %v925_v21   ;;  %v1050_v23 = vpop.f32.mrb[14].mxu1  ;;  %v418_v24 = vpop.f32.mrb[15].mxu0 }
 0x111   : > { %v498_v25 = vpop.f32.mrb[15].mxu1  ;;  %v890_v26 = vpack.c.bf16 %v1026_v22, %v418_v24 }
 0x112   : > { %v930_v27 = vpack.c.bf16 %v1050_v23, %v498_v25 }
 0x113   : > { %938 = vst [vmem:[%s1343_s25 + $0x38] sm:$0xff] %v890_v26  }
 0x114   : > { %946 = vst [vmem:[%s1343_s25 + $0x78] sm:$0xff] %v930_v27  }
 0x115   : > { %1129 = shalt.err (!%p1126_p3)
}
 0x116   : > { %s1130_s7 = scalar_lea.hbm %s1364_s30, 2048  ;;  %s1134_s16 = scalar_lea.hbm %s1415_s2, 4096 }
 0x117   : > { %p1131_p4 = scmp.ne.s32.totalorder %s1364_s30, %s1130_s7  ;;  %p1135_p9 = scmp.lt.u32.totalorder %s1364_s30, %s1415_s2 }
 0x118   : > { %p1136_p10 = scmp.lt.u32.totalorder %s1134_s16, %s1130_s7  ;;  %p1138_p12 = scmp.lt.u32.totalorder %s1130_s7, %s1364_s30 }
 0x119   : > { %p1132_p7 = pnand %p1131_p4, %p1236_p5 }
 0x11a   : > { %p1137_p11 = por %p1136_p10, %p1135_p9 }
 0x11b   : > { %p1133_p8 = pneg %p1132_p7 }
 0x11c   : > { %p1139_p13 = por %p1138_p12, %p1137_p11 }
 0x11e   : > { %p1140_p0 = pnand %p1139_p13, %p1133_p8 }
 0x120   : > { %1143 = shalt.err (!%p1140_p0)
}
 0x121   : > { %s1181_s22 = smov 64   ;;  %s1182_s23 = smov 4  }
 0x122   : > { %1075 = dma.vmem_to_hbm [thread:$0]  (%p1236_p5), %s1366_s27, 2048, %s1364_s30, %s1372_s13, %s1181_s22, %s1181_s22, %s1182_s23  }
 0x123 PF: > { %p1081_p1 = scmp.ge.s32.totalorder %s1178_s12, 2  ;;  %s696_s24 = sand.u32 1, %s1166_s9  }
 0x124   : > { %s697_s25 = scalar_lea.sflag [#allocation3], %s696_s24 }
 0x125   : > { %p1078_p2 = pnand %p1081_p1, %p1240_p6 }
 0x127   : > { %1161 = dma.done.wait (!%p1078_p2), %s697_s25, 2048  }
 0x128   : > { %1163 = vsyncadd (!%p1078_p2), %s697_s25, 4294965248  ;;  %p12_p3 = scmp.ge.s32.totalorder %s1223_s15, 4   ;;  %s1418_s9 = smov %s1170_s10 }
 0x129   : > { %s1419_s10 = smov %s1174_s11  ;;  %s1420_s11 = smov %s1234_s18 }
 0x12a   : > { %s1421_s12 = smov %s1223_s15  ;;  %14 = sbr.rel (!%p12_p3) target bundleno = 3 (0x3), region = 63 }
 0x131   :  { %702 = vsyncpa [#allocation3], 1 }
 0x132   :  { %704 = vsyncpa [#allocation3 + $0x1], 1 }

</bundles_post_ra>
